<compile_context>
chip_gen: v5e
topology: v5e:2x2
jax: 0.10.0
libtpu: 0.0.40
codegen_flags: <defaults>
</compile_context>

<pallas_src>
import jax
import jax.numpy as jnp
from jax.experimental import pallas as pl
from jax.experimental.pallas import tpu as pltpu


def mlp_head_kernel(x_ref, w1_ref, b1_ref, w2_ref, b2_ref, o_ref):
    # x: [TB, D], w1: [D, D], b1: [1, D], w2: [D, Lp], b2: [1, Lp], o: [TB, Lp]
    x = x_ref[...]
    # Linear 1 + ReLU  (MXU matmul, f32 accumulate; VPU epilogue in f32)
    h = jnp.dot(x, w1_ref[...], preferred_element_type=jnp.float32) + b1_ref[...]
    h = jnp.maximum(h, 0.0)
    # Linear 2 (lane-dense padded N = Lp; padded columns have zero weights/bias)
    logits = jnp.dot(h, w2_ref[...], preferred_element_type=jnp.float32) + b2_ref[...]
    # F.normalize(dim=1): x / max(||x||_2, eps)  ==  x * rsqrt(max(||x||^2, eps^2))
    # (rsqrt goes to the EUP slot; padded-zero columns do not perturb the norm.)
    sq = jnp.sum(logits * logits, axis=1, keepdims=True)
    eps = jnp.float32(1e-12)
    inv = jax.lax.rsqrt(jnp.maximum(sq, eps * eps))
    o_ref[...] = (logits * inv).astype(o_ref.dtype)


def _round_up(n, m):
    return ((n + m - 1) // m) * m


def classification_model_forward(x, w1, b1, w2, b2):
    B, D = x.shape
    L = w2.shape[1]

    # --- lane-dense label dimension (pad 35 -> 128 with zeros) ---
    LANE = 128
    Lp = _round_up(L, LANE)
    if Lp != L:
        w2 = jnp.pad(w2, ((0, 0), (0, Lp - L)))
        b2 = jnp.pad(b2, ((0, 0), (0, Lp - L)))

    # --- batch tiling: 1-D parallel grid, weights resident across the grid ---
    # Tiles stay tiny (f32, D small), well under scoped VMEM on every generation
    # including v7x's smaller VMEM.
    if B <= 512:
        TB = _round_up(max(B, 8), 8)
    else:
        TB = 512
    Bp = _round_up(B, TB)
    xp = jnp.pad(x, ((0, Bp - B), (0, 0))) if Bp != B else x

    grid = (Bp // TB,)

    out = pl.pallas_call(
        mlp_head_kernel,
        out_shape=jax.ShapeDtypeStruct((Bp, Lp), jnp.float32),
        grid=grid,
        in_specs=[
            pl.BlockSpec((TB, D), lambda i: (i, 0)),   # x tile streams over batch
            pl.BlockSpec((D, D), lambda i: (0, 0)),    # weights stay resident
            pl.BlockSpec((1, D), lambda i: (0, 0)),
            pl.BlockSpec((D, Lp), lambda i: (0, 0)),
            pl.BlockSpec((1, Lp), lambda i: (0, 0)),
        ],
        out_specs=pl.BlockSpec((TB, Lp), lambda i: (i, 0)),
        compiler_params=pltpu.CompilerParams(
            dimension_semantics=("parallel",)
        ),
    )(xp, w1, b1, w2, b2)

    # Slice back to the real batch and the real 35 labels.
    return out[:B, :L]


if __name__ == "__main__":
    # Small, forward-implied shapes.
    B = 8            # batch
    D = 32           # backbone_dim
    L = 35           # num_labels (== 35, so no +1 in PyTorch __init__)

    key = jax.random.PRNGKey(0)
    kx, k1, k2, k3, k4 = jax.random.split(key, 5)

    # Input: features produced by the (identity) backbone.
    x = jax.random.normal(kx, (B, D), dtype=jnp.float32)

    # Deterministic parameter init (same shapes as nn.Linear(D, D) and nn.Linear(D, L)).
    w1 = jax.random.normal(k1, (D, D), dtype=jnp.float32) * 0.02
    b1 = jax.random.normal(k2, (1, D), dtype=jnp.float32) * 0.02
    w2 = jax.random.normal(k3, (D, L), dtype=jnp.float32) * 0.02
    b2 = jax.random.normal(k4, (1, L), dtype=jnp.float32) * 0.02

    out = classification_model_forward(x, w1, b1, w2, b2)
    out = jax.block_until_ready(out)

    # Pure-JAX reference check (same semantics as the PyTorch forward).
    h_ref = jnp.maximum(x @ w1 + b1, 0.0)
    logits_ref = h_ref @ w2 + b2
    denom = jnp.maximum(
        jnp.sqrt(jnp.sum(logits_ref * logits_ref, axis=1, keepdims=True)), 1e-12
    )
    ref = logits_ref / denom
    assert out.shape == (B, L), f"bad output shape {out.shape}"
    assert jnp.allclose(out, ref, atol=1e-5, rtol=1e-5), "mismatch vs reference"

    print("KERNEL_OK")
</pallas_src>

<mosaic_0001>
module attributes {stable_mosaic.version = 11 : i64} {
  func.func @mlp_head_kernel(%arg0: i32, %arg1: memref<8x32xf32, #tpu.memory_space<vmem>>, %arg2: memref<32x32xf32, #tpu.memory_space<vmem>>, %arg3: memref<1x32xf32, #tpu.memory_space<vmem>>, %arg4: memref<32x128xf32, #tpu.memory_space<vmem>>, %arg5: memref<1x128xf32, #tpu.memory_space<vmem>>, %arg6: memref<8x128xf32, #tpu.memory_space<vmem>>) attributes {dimension_semantics = [#tpu.dimension_semantics<parallel>], iteration_bounds = array<i64: 1>, scalar_prefetch = 0 : i64, scratch_operands = 0 : i64, tpu.core_type = #tpu.core_type<tc>, window_params = [{transform_indices = @transform_0, window_bounds = array<i64: 8, 32>}, {pipeline_mode = #tpu.pipeline_mode<synchronous>, transform_indices = @transform_1, window_bounds = array<i64: 32, 32>}, {pipeline_mode = #tpu.pipeline_mode<synchronous>, transform_indices = @transform_2, window_bounds = array<i64: 1, 32>}, {pipeline_mode = #tpu.pipeline_mode<synchronous>, transform_indices = @transform_3, window_bounds = array<i64: 32, 128>}, {pipeline_mode = #tpu.pipeline_mode<synchronous>, transform_indices = @transform_4, window_bounds = array<i64: 1, 128>}, {transform_indices = @transform_5, window_bounds = array<i64: 8, 128>}]} {
    %c0 = arith.constant 0 : index
    %c0_0 = arith.constant 0 : index
    %0 = vector.load %arg1[%c0, %c0_0] : memref<8x32xf32, #tpu.memory_space<vmem>>, vector<8x32xf32>
    %c0_1 = arith.constant 0 : index
    %c0_2 = arith.constant 0 : index
    %1 = vector.load %arg2[%c0_1, %c0_2] : memref<32x32xf32, #tpu.memory_space<vmem>>, vector<32x32xf32>
    %cst = arith.constant dense<0.000000e+00> : vector<8x32xf32>
    %2 = tpu.matmul %0, %1, %cst {dimension_numbers = #tpu.dot_dimension_numbers<[1], [0], [0], [1], [0, 0, 1, 1], [], []>} : vector<8x32xf32>, vector<32x32xf32>, vector<8x32xf32> -> vector<8x32xf32>
    %c0_3 = arith.constant 0 : index
    %c0_4 = arith.constant 0 : index
    %3 = vector.load %arg3[%c0_3, %c0_4] : memref<1x32xf32, #tpu.memory_space<vmem>>, vector<1x32xf32>
    %4 = vector.broadcast %3 : vector<1x32xf32> to vector<8x32xf32>
    %5 = arith.addf %2, %4 : vector<8x32xf32>
    %cst_5 = arith.constant 0.000000e+00 : f32
    %6 = vector.broadcast %cst_5 : f32 to vector<8x32xf32>
    %7 = arith.maximumf %5, %6 : vector<8x32xf32>
    %c0_6 = arith.constant 0 : index
    %c0_7 = arith.constant 0 : index
    %8 = vector.load %arg4[%c0_6, %c0_7] : memref<32x128xf32, #tpu.memory_space<vmem>>, vector<32x128xf32>
    %cst_8 = arith.constant dense<0.000000e+00> : vector<8x128xf32>
    %9 = tpu.matmul %7, %8, %cst_8 {dimension_numbers = #tpu.dot_dimension_numbers<[1], [0], [0], [1], [0, 0, 1, 1], [], []>} : vector<8x32xf32>, vector<32x128xf32>, vector<8x128xf32> -> vector<8x128xf32>
    %c0_9 = arith.constant 0 : index
    %c0_10 = arith.constant 0 : index
    %10 = vector.load %arg5[%c0_9, %c0_10] : memref<1x128xf32, #tpu.memory_space<vmem>>, vector<1x128xf32>
    %11 = vector.broadcast %10 : vector<1x128xf32> to vector<8x128xf32>
    %12 = arith.addf %9, %11 : vector<8x128xf32>
    %13 = arith.mulf %12, %12 : vector<8x128xf32>
    %cst_11 = arith.constant dense<0.000000e+00> : vector<8xf32>
    %14 = vector.multi_reduction <add>, %13, %cst_11 [1] : vector<8x128xf32> to vector<8xf32>
    %15 = vector.shape_cast %14 : vector<8xf32> to vector<8x1xf32>
    %cst_12 = arith.constant 9.99999996E-13 : f32
    %cst_13 = arith.constant 9.99999996E-13 : f32
    %16 = arith.mulf %cst_12, %cst_13 : f32
    %17 = vector.broadcast %16 : f32 to vector<8x1xf32>
    %18 = arith.maximumf %15, %17 : vector<8x1xf32>
    %19 = math.rsqrt %18 : vector<8x1xf32>
    %20 = vector.broadcast %19 : vector<8x1xf32> to vector<8x128xf32>
    %21 = arith.mulf %12, %20 : vector<8x128xf32>
    %c0_14 = arith.constant 0 : index
    %c0_15 = arith.constant 0 : index
    %22 = vector.load %arg6[%c0_14, %c0_15] : memref<8x128xf32, #tpu.memory_space<vmem>>, vector<8x128xf32>
    tpu.vector_store %arg6[%c0_14, %c0_15], %21 {strides = array<i32>} : memref<8x128xf32, #tpu.memory_space<vmem>>, vector<8x128xf32>,
    return
  }
  func.func @transform_0(%arg0: i32) -> (i32, i32) {
    %c0_i32 = arith.constant 0 : i32
    %c0_i32_0 = arith.constant 0 : i32
    return %arg0, %c0_i32 : i32, i32
  }
  func.func @transform_1(%arg0: i32) -> (i32, i32) {
    %c0_i32 = arith.constant 0 : i32
    %c0_i32_0 = arith.constant 0 : i32
    %c0_i32_1 = arith.constant 0 : i32
    return %c0_i32, %c0_i32_0 : i32, i32
  }
  func.func @transform_2(%arg0: i32) -> (i32, i32) {
    %c0_i32 = arith.constant 0 : i32
    %c0_i32_0 = arith.constant 0 : i32
    %c0_i32_1 = arith.constant 0 : i32
    return %c0_i32, %c0_i32_0 : i32, i32
  }
  func.func @transform_3(%arg0: i32) -> (i32, i32) {
    %c0_i32 = arith.constant 0 : i32
    %c0_i32_0 = arith.constant 0 : i32
    %c0_i32_1 = arith.constant 0 : i32
    return %c0_i32, %c0_i32_0 : i32, i32
  }
  func.func @transform_4(%arg0: i32) -> (i32, i32) {
    %c0_i32 = arith.constant 0 : i32
    %c0_i32_0 = arith.constant 0 : i32
    %c0_i32_1 = arith.constant 0 : i32
    return %c0_i32, %c0_i32_0 : i32, i32
  }
  func.func @transform_5(%arg0: i32) -> (i32, i32) {
    %c0_i32 = arith.constant 0 : i32
    %c0_i32_0 = arith.constant 0 : i32
    return %arg0, %c0_i32 : i32, i32
  }
}

</mosaic_0001>

<bundles_post_ra>
// kernel: tpu_custom_call.1
= control target key start
LH: loop header
LB: loop body
LE: loop exit
PB: predicated region body
PF: predicated region fallthrough
CT: control target
= control target key end

     0   :  { %10 = vsyncpa [#allocation3], 0  ;;  %s333_s0 = inlined_call_operand.hbm [shape: f32[8,32], index: 0, kind: input, shape index: {}]   ;;  %s334_s1 = inlined_call_operand.hbm [shape: f32[32,32], index: 1, kind: input, shape index: {}]   ;;  %s335_s2 = inlined_call_operand.vmem [shape: f32[1,32], index: 2, kind: input, shape index: {}]   ;;  %s336_s3 = inlined_call_operand.hbm [shape: f32[32,128], index: 3, kind: input, shape index: {}]   ;;  %s337_s4 = inlined_call_operand.vmem [shape: f32[1,128], index: 4, kind: input, shape index: {}]   ;;  %s338_s5 = inlined_call_operand.hbm [shape: f32[8,128], index: 5, kind: output, shape index: {}]  }
   0x1   :  { %11 = vsyncpa [#allocation6], 0  ;;  %s28_s20 = sshll.u32 %s334_s1, 4  ;;  %s29_s20 = int_to_ptr.hbm [resolvable:$true] %s28_s20 }
   0x2   :  { %12 = vsyncpa [#allocation4], 0  ;;  %s279_s21 = smov [#allocation5]   ;;  %s18_s25 = sshll.u32 %s333_s0, 4  ;;  %s19_s25 = int_to_ptr.hbm [resolvable:$true] %s18_s25 }
   0x3   :  { %s30_s22 = sshll.u32 %s279_s21, 4  ;;  %s280_s26 = smov 128   ;;  %s31_s22 = int_to_ptr.vmem [resolvable:$true] %s30_s22 }
   0x4   :  { %s281_s27 = smov 8   ;;  %s282_s28 = smov [#allocation2]  }
   0x5   :  { %36 = dma.hbm_to_vmem [thread:$0]  %s29_s20, 512, %s31_s22, [#allocation6], %s280_s26, %s280_s26, %s281_s27  }
   0x6   :  { %s20_s29 = sshll.u32 %s282_s28, 4  ;;  %s43_s7 = sshll.u32 %s336_s3, 4  ;;  %s21_s29 = int_to_ptr.vmem [resolvable:$true] %s20_s29  ;;  %s44_s7 = int_to_ptr.hbm [resolvable:$true] %s43_s7 }
   0x7   :  { %23 = dma.hbm_to_vmem [thread:$0]  %s19_s25, 128, %s21_s29, [#allocation3]  }
   0x8   :  { %s283_s1 = smov [#allocation7]  }
   0x9   :  { %s45_s8 = sshll.u32 %s283_s1, 4  ;;  %s46_s8 = int_to_ptr.vmem [resolvable:$true] %s45_s8 }
   0xa   :  { %51 = dma.hbm_to_vmem [thread:$0]  %s44_s7, 512, %s46_s8, [#allocation6], %s280_s26, %s280_s26, %s281_s27  }
   0xb   :  { %273 = dma.done.wait [#allocation3], 128  }
   0xc   :  { %274 = vsyncadd [#allocation3], 4294967168 }
   0xd   :  { %275 = dma.done.wait [#allocation6], 1024  }
   0xe   :  { %276 = vsyncadd [#allocation6], 4294966272  ;;  %v70_v0 = vld [vmem:[#allocation5 + $0x18] sm:$0xff]  ;;  %v69_v1 = vld [vmem:[#allocation5 + $0x10] sm:$0xff]  ;;  %vm75_vm0 = vcmask 261120  }
   0xf   :  { %91 = vmatpush.msra.mxu0 %v70_v0  ;;  %v103_v2 = vld [vmem:[#allocation7 + $0x18] sm:$0xff]  ;;  %v68_v3 = vld [vmem:[#allocation5 + $0x8] sm:$0xff]  ;;  %v67_v4 = vld [vmem:[#allocation5] sm:$0xff] }
  0x10   :  { %123 = vmatpush.msra.mxu1 %v103_v2  ;;  %v66_v5 = vld [vmem:[#allocation2] sm:$0xff]  ;;  %v102_v6 = vld [vmem:[#allocation7 + $0x10] sm:$0xff]  ;;  %v101_v7 = vld [vmem:[#allocation7 + $0x8] sm:$0xff] }
  0x11   :  { %92 = vmatpush.msra.mxu0 %v69_v1  ;;  %v100_v8 = vld [vmem:[#allocation7] sm:$0xff]  ;;  %v173_v9 = vld [vmem:[%s335_s2] ss:$0 sm:$0xff]  ;;  %s284_s2 = smov [#allocation8]  }
  0x12   :  { %124 = vmatpush.msra.mxu1 %v102_v6  ;;  %v174_v13 = vld [vmem:[%s337_s4] ss:$0 sm:$0xff]  ;;  %s152_s11 = sshll.u32 %s284_s2, 4  ;;  %s154_s4 = sshll.u32 %s338_s5, 4  ;;  %s153_s11 = int_to_ptr.vmem [resolvable:$true] %s152_s11  ;;  %s155_s4 = int_to_ptr.hbm [resolvable:$true] %s154_s4 }
  0x13   :  { %93 = vmatpush.msra.mxu0 %v68_v3 }
  0x14   :  { %125 = vmatpush.msra.mxu1 %v101_v7 }
  0x15   :  { %94 = vmatpush.msra.mxu0 %v67_v4 }
  0x16   :  { %165 = vmatmul.msk.f32.vlgmr.msra.gmra.mxu0 %vm75_vm0, %v66_v5  ;;  %126 = vmatpush.msra.mxu1 %v100_v8 }
  0x93   :  { %v96_v10 = vpop.f32.mrf.mxu0 }
  0x94   :  { %v97_v11 = vadd.f32 %v173_v9, %v96_v10 }
  0x96   :  { %v99_v12 = vmax.f32 %v97_v11, 0.0 }
  0x98   :  { %166 = vmatmul.msk.f32.vlgmr.msra.gmra.mxu1 %vm75_vm0, %v99_v12 }
 0x115   :  { %v128_v14 = vpop.f32.mrf.mxu1 }
 0x116   :  { %v129_v15 = vadd.f32 %v174_v13, %v128_v14 }
 0x118   :  { %v131_v16 = vmul.f32 %v129_v15, %v129_v15 }
 0x11a   :  { %132 = vadd.xlane.f32.xlu0 %v131_v16 }
 0x18d   :  { %v133_v17 = vpop.xlane.xlu0 %132 }
 0x18e   :  { %v134_v18 = vmax.f32 %v133_v17, 1e-24 }
 0x190   :  { %175 = vrsqrt.f32 %v134_v18  ;;  %vm141_vm2 = vweird.f32 %v134_v18 }
 0x196   :  { %v176_v19 = vpop.eup %175 }
 0x197   :  { %v136_v20 = vmul.f32 %v176_v19, %v134_v18  ;;  %vm142_vm1 = vweird.f32 %v176_v19 }
 0x198   :  { %vm143_vm3 = vmor %vm141_vm2, %vm142_vm1 }
 0x199   :  { %v137_v21 = vmul.f32 %v176_v19, %v136_v20 }
 0x19b   :  { %v138_v22 = vmul.f32 0.5, %v137_v21 }
 0x19d   :  { %v139_v23 = vsub.f32 1.5, %v138_v22 }
 0x19f   :  { %v140_v24 = vmul.f32 %v176_v19, %v139_v23 }
 0x1a1   :  { %v144_v25 = vsel %vm143_vm3, %v176_v19, %v140_v24 }
 0x1a2   :  { %v145_v26 = vmul.f32 %v144_v25, %v129_v15 }
 0x1a4   :  { %146 = vst [vmem:[#allocation8] sm:$0xff] %v145_v26 }
 0x1a5   :  { %157 = dma.vmem_to_hbm [thread:$0]  %s153_s11, 128, %s155_s4, [#allocation4]  }
 0x1a6   :  { %277 = dma.done.wait [#allocation4], 128  }
 0x1a7   :  { %278 = vsyncadd [#allocation4], 4294967168 }
 0x1a8   :  { %162 = vsyncpa [#allocation3], 1 }
 0x1a9   :  { %163 = vsyncpa [#allocation6], 1 }
 0x1aa   :  { %164 = vsyncpa [#allocation4], 1 }

</bundles_post_ra>
